<compile_context>
chip_gen: v6e
topology: v6e:2x2x1
jax: 0.10.0
libtpu: 0.0.40
codegen_flags: <defaults>
</compile_context>

<pallas_src>
import math

import numpy as np
import jax
import jax.numpy as jnp
from jax.experimental import pallas as pl
from jax.experimental.pallas import tpu as pltpu


def _round_up(x, m):
    return ((x + m - 1) // m) * m


def _dft_synth_kernel(basis_ref, coef_ref, out_ref, acc_ref):
    # basis_ref: (tT, tk)   coef_ref: (tk, td)   out_ref/acc_ref: (tT, td)
    @pl.when(pl.program_id(3) == 0)
    def _init():
        acc_ref[...] = jnp.zeros_like(acc_ref)

    acc_ref[...] += jnp.dot(basis_ref[...], coef_ref[...],
                            preferred_element_type=jnp.float32)

    @pl.when(pl.program_id(3) == pl.num_programs(3) - 1)
    def _finalize():
        out_ref[...] = acc_ref[...].astype(out_ref.dtype)


class FourierLayer:
    """JAX/Pallas port of the PyTorch FourierLayer (no learned parameters)."""

    def __init__(self, d_model, pred_len, k=None, low_freq=1,
                 operand_dtype=jnp.float32):
        self.d_model = d_model
        self.pred_len = pred_len
        self.k = k if k is not None else 2 * d_model // 3
        self.low_freq = low_freq
        self.operand_dtype = jnp.dtype(operand_dtype)
        self._basis_cache = {}

    # ---- fixed DFT synthesis basis: depends only on (t, pred_len, low_freq) ----
    def _freqs(self, t):
        f_all = np.fft.rfftfreq(t)
        if t % 2 == 0:
            f_all = f_all[self.low_freq:-1]
        else:
            f_all = f_all[self.low_freq:]
        return np.asarray(f_all, dtype=np.float64)

    def _basis(self, t, T_pad, K2, F):
        key = (t, T_pad, K2, self.low_freq)
        basis = self._basis_cache.get(key)
        if basis is None:
            f_all = self._freqs(t)
            n_val = np.arange(T_pad, dtype=np.float64)[:, None]        # (T_pad, 1)
            theta = 2.0 * math.pi * n_val * f_all[None, :]             # (T_pad, F)
            basis_np = np.zeros((T_pad, K2), dtype=np.float32)
            basis_np[:, :F] = np.cos(theta)
            basis_np[:, F:2 * F] = np.sin(theta)
            basis = jnp.asarray(basis_np)
            self._basis_cache[key] = basis
        return basis

    @staticmethod
    def _pick_tiles(b, T_pad, d_pad, two_f):
        # Contraction tile must divide the padded contraction exactly (no
        # garbage reads on the reduction axis).
        tk = min(_round_up(two_f, 128), 2048)
        K2 = _round_up(two_f, tk)
        tT = min(T_pad, 512)             # multiple of 8
        td = min(d_pad, 512)             # multiple of 128
        # v7x has 2 TensorCores: make sure some parallel axis has >= 2 blocks.
        if b == 1 and pl.cdiv(T_pad, tT) == 1 and pl.cdiv(d_pad, td) == 1:
            if T_pad >= 16:
                tT = _round_up(T_pad // 2, 8)
            elif d_pad >= 256:
                td = d_pad // 2
        return tT, td, tk, K2

    def __call__(self, x):
        b, t, d = x.shape
        x = x.astype(jnp.float32)

        # --- glue: rFFT over time + frequency slicing (no Pallas FFT primitive) ---
        x_freq = jnp.fft.rfft(x, axis=1)                       # (b, t//2+1, d)
        if t % 2 == 0:
            x_freq = x_freq[:, self.low_freq:-1]
        else:
            x_freq = x_freq[:, self.low_freq:]
        F = x_freq.shape[1]

        # --- glue: top-k by magnitude per (b, d) along the frequency axis ---
        xf_t = jnp.transpose(x_freq, (0, 2, 1))                # (b, d, F)
        _, idx = jax.lax.top_k(jnp.abs(xf_t), self.k)          # (b, d, k)
        xf_sel = jnp.take_along_axis(xf_t, idx, axis=2)        # (b, d, k) complex
        amp = jnp.abs(xf_sel) / t
        phase = jnp.angle(xf_sel)
        coef_c = 2.0 * amp * jnp.cos(phase)                    # (b, d, k)
        coef_s = -2.0 * amp * jnp.sin(phase)                   # (b, d, k)

        T = t + self.pred_len
        T_pad = _round_up(T, 8)
        d_pad = _round_up(d, 128)
        tT, td, tk, K2 = self._pick_tiles(b, T_pad, d_pad, 2 * F)

        # Scatter the k selected coefficients onto the zero-padded rFFT grid.
        # TODO(synk): for very large (b, d, k) fold this assembly into a Pallas
        # kernel with idx in SMEM (PrefetchScalarGridSpec) to avoid XLA scatter.
        b_idx = jnp.arange(b)[:, None, None]
        d_idx = jnp.arange(d)[None, :, None]
        zeros = jnp.zeros((b, F, d), jnp.float32)
        C = zeros.at[b_idx, idx, d_idx].set(coef_c, unique_indices=True)
        S = zeros.at[b_idx, idx, d_idx].set(coef_s, unique_indices=True)
        coef = jnp.concatenate([C, S], axis=1)                 # (b, 2F, d)
        coef = jnp.pad(coef, ((0, 0), (0, K2 - 2 * F), (0, d_pad - d)))

        basis = self._basis(t, T_pad, K2, F)                   # (T_pad, K2)

        basis_op = basis.astype(self.operand_dtype)
        coef_op = coef.astype(self.operand_dtype)

        nd = pl.cdiv(d_pad, td)
        nt = pl.cdiv(T_pad, tT)
        nk = K2 // tk
        itemsize = self.operand_dtype.itemsize
        vmem_bytes = (2 * tT * tk * itemsize + 2 * tk * td * itemsize
                      + 2 * tT * td * 4 + tT * td * 4)
        vmem_limit = int(min(max(2 * vmem_bytes, 16 * 2**20), 48 * 2**20))

        # --- Pallas: out[b, n, :] (+)= basis[n, kslice] @ coef[b, kslice, :] ---
        # Grid order (b, d-tiles, T-tiles, k-tiles): coef block index is constant
        # across the inner T loop -> fetched once per (b, d-tile); basis streams.
        out = pl.pallas_call(
            _dft_synth_kernel,
            out_shape=jax.ShapeDtypeStruct((b, T_pad, d_pad), jnp.float32),
            grid=(b, nd, nt, nk),
            in_specs=[
                pl.BlockSpec((tT, tk), lambda bi, di, ti, ki: (ti, ki)),
                pl.BlockSpec((None, tk, td), lambda bi, di, ti, ki: (bi, ki, di)),
            ],
            out_specs=pl.BlockSpec((None, tT, td),
                                   lambda bi, di, ti, ki: (bi, ti, di)),
            scratch_shapes=[pltpu.VMEM((tT, td), jnp.float32)],
            compiler_params=pltpu.CompilerParams(
                dimension_semantics=("parallel", "parallel", "parallel",
                                     "arbitrary"),
                vmem_limit_bytes=vmem_limit),
            cost_estimate=pl.CostEstimate(
                flops=int(2 * b * T_pad * d_pad * K2),
                transcendentals=0,
                bytes_accessed=int(itemsize * (T_pad * K2 + b * K2 * d_pad)
                                   + 4 * b * T_pad * d_pad)),
        )(basis_op, coef_op)

        return out[:, :T, :d]


if __name__ == "__main__":
    # Small, deterministic example: b=2, t=16, d_model=8, pred_len=4.
    b, t, d_model, pred_len = 2, 16, 8, 4
    key = jax.random.PRNGKey(0)
    x = jax.random.normal(key, (b, t, d_model), dtype=jnp.float32)

    layer = FourierLayer(d_model=d_model, pred_len=pred_len)   # k = 2*8//3 = 5
    out = jax.block_until_ready(layer(x))
    assert out.shape == (b, t + pred_len, d_model), out.shape

    # Pure-JAX reference mirroring the PyTorch math (conjugate-doubled
    # sum of amp * cos(2*pi*f*t + phase) over the selected frequencies).
    x_freq = jnp.fft.rfft(x, axis=1)
    if t % 2 == 0:
        x_freq = x_freq[:, layer.low_freq:-1]
        f = jnp.fft.rfftfreq(t)[layer.low_freq:-1]
    else:
        x_freq = x_freq[:, layer.low_freq:]
        f = jnp.fft.rfftfreq(t)[layer.low_freq:]
    xf_t = jnp.transpose(x_freq, (0, 2, 1))
    _, idx = jax.lax.top_k(jnp.abs(xf_t), layer.k)
    xf_sel = jnp.transpose(jnp.take_along_axis(xf_t, idx, axis=2), (0, 2, 1))   # (b,k,d)
    f_sel = jnp.transpose(f.astype(jnp.float32)[idx], (0, 2, 1))                # (b,k,d)
    amp = jnp.abs(xf_sel) / t
    phase = jnp.angle(xf_sel)
    amp2 = jnp.concatenate([amp, amp], axis=1)
    f2 = jnp.concatenate([f_sel, -f_sel], axis=1)
    phase2 = jnp.concatenate([phase, -phase], axis=1)
    T = t + pred_len
    t_val = jnp.arange(T, dtype=jnp.float32)[None, None, :, None]               # (1,1,T,1)
    ref = jnp.sum(
        amp2[:, :, None, :] * jnp.cos(2.0 * math.pi * f2[:, :, None, :] * t_val
                                      + phase2[:, :, None, :]),
        axis=1)                                                                 # (b,T,d)

    err = float(jnp.max(jnp.abs(out - ref)))
    assert jnp.allclose(out, ref, atol=1e-4, rtol=1e-4), err

    print("KERNEL_OK")
</pallas_src>

<mosaic_0001>
module attributes {stable_mosaic.version = 11 : i64} {
  func.func @_dft_synth_kernel(%arg0: i32, %arg1: i32, %arg2: i32, %arg3: i32, %arg4: memref<24x128xf32, #tpu.memory_space<vmem>>, %arg5: memref<1x128x128xf32, #tpu.memory_space<vmem>>, %arg6: memref<1x24x128xf32, #tpu.memory_space<vmem>>, %arg7: memref<24x128xf32, #tpu.memory_space<vmem>>) attributes {dimension_semantics = [#tpu.dimension_semantics<parallel>, #tpu.dimension_semantics<parallel>, #tpu.dimension_semantics<parallel>, #tpu.dimension_semantics<arbitrary>], iteration_bounds = array<i64: 2, 1, 1, 1>, scalar_prefetch = 0 : i64, scratch_operands = 1 : i64, tpu.core_type = #tpu.core_type<tc>, window_params = [{transform_indices = @transform_0, window_bounds = array<i64: 24, 128>}, {transform_indices = @transform_1, window_bounds = array<i64: 1, 128, 128>}, {transform_indices = @transform_2, window_bounds = array<i64: 1, 24, 128>}]} {
    %c0_i32 = arith.constant 0 : i32
    %0 = arith.cmpi eq, %arg3, %c0_i32 : i32
    %1 = arith.extui %0 : i1 to i32
    %c0_i32_0 = arith.constant 0 : i32
    %2 = arith.cmpi ne, %1, %c0_i32_0 : i32
    scf.if %2 {
      %cst_11 = arith.constant 0.000000e+00 : f32
      %13 = vector.broadcast %cst_11 : f32 to vector<24x128xf32>
      %c0_12 = arith.constant 0 : index
      %c0_13 = arith.constant 0 : index
      %14 = vector.load %arg7[%c0_12, %c0_13] : memref<24x128xf32, #tpu.memory_space<vmem>>, vector<24x128xf32>
      tpu.vector_store %arg7[%c0_12, %c0_13], %13 {strides = array<i32>} : memref<24x128xf32, #tpu.memory_space<vmem>>, vector<24x128xf32>,
    } else {
    }
    %c0 = arith.constant 0 : index
    %c0_1 = arith.constant 0 : index
    %3 = vector.load %arg7[%c0, %c0_1] : memref<24x128xf32, #tpu.memory_space<vmem>>, vector<24x128xf32>
    %c0_2 = arith.constant 0 : index
    %c0_3 = arith.constant 0 : index
    %4 = vector.load %arg4[%c0_2, %c0_3] : memref<24x128xf32, #tpu.memory_space<vmem>>, vector<24x128xf32>
    %c0_4 = arith.constant 0 : index
    %c0_5 = arith.constant 0 : index
    %c0_6 = arith.constant 0 : index
    %5 = vector.load %arg5[%c0_4, %c0_5, %c0_6] : memref<1x128x128xf32, #tpu.memory_space<vmem>>, vector<1x128x128xf32>
    %6 = vector.shape_cast %5 : vector<1x128x128xf32> to vector<128x128xf32>
    %cst = arith.constant dense<0.000000e+00> : vector<24x128xf32>
    %7 = tpu.matmul %4, %6, %cst {dimension_numbers = #tpu.dot_dimension_numbers<[1], [0], [0], [1], [0, 0, 1, 1], [], []>} : vector<24x128xf32>, vector<128x128xf32>, vector<24x128xf32> -> vector<24x128xf32>
    %8 = arith.addf %3, %7 : vector<24x128xf32>
    %c0_7 = arith.constant 0 : index
    %c0_8 = arith.constant 0 : index
    %9 = vector.load %arg7[%c0_7, %c0_8] : memref<24x128xf32, #tpu.memory_space<vmem>>, vector<24x128xf32>
    tpu.vector_store %arg7[%c0_7, %c0_8], %8 {strides = array<i32>} : memref<24x128xf32, #tpu.memory_space<vmem>>, vector<24x128xf32>,
    %c0_i32_9 = arith.constant 0 : i32
    %10 = arith.cmpi eq, %arg3, %c0_i32_9 : i32
    %11 = arith.extui %10 : i1 to i32
    %c0_i32_10 = arith.constant 0 : i32
    %12 = arith.cmpi ne, %11, %c0_i32_10 : i32
    scf.if %12 {
      %c0_11 = arith.constant 0 : index
      %c0_12 = arith.constant 0 : index
      %13 = vector.load %arg7[%c0_11, %c0_12] : memref<24x128xf32, #tpu.memory_space<vmem>>, vector<24x128xf32>
      %c0_13 = arith.constant 0 : index
      %c0_14 = arith.constant 0 : index
      %c0_15 = arith.constant 0 : index
      %14 = vector.load %arg6[%c0_13, %c0_14, %c0_15] : memref<1x24x128xf32, #tpu.memory_space<vmem>>, vector<1x24x128xf32>
      %15 = vector.shape_cast %14 : vector<1x24x128xf32> to vector<24x128xf32>
      %16 = vector.shape_cast %13 : vector<24x128xf32> to vector<1x24x128xf32>
      tpu.vector_store %arg6[%c0_13, %c0_14, %c0_15], %16 {strides = array<i32>} : memref<1x24x128xf32, #tpu.memory_space<vmem>>, vector<1x24x128xf32>,
    } else {
    }
    return
  }
  func.func @transform_0(%arg0: i32, %arg1: i32, %arg2: i32, %arg3: i32) -> (i32, i32) {
    %c0_i32 = arith.constant 0 : i32
    return %arg2, %arg3 : i32, i32
  }
  func.func @transform_1(%arg0: i32, %arg1: i32, %arg2: i32, %arg3: i32) -> (i32, i32, i32) {
    %c0_i32 = arith.constant 0 : i32
    return %arg0, %arg3, %arg1 : i32, i32, i32
  }
  func.func @transform_2(%arg0: i32, %arg1: i32, %arg2: i32, %arg3: i32) -> (i32, i32, i32) {
    %c0_i32 = arith.constant 0 : i32
    return %arg0, %arg2, %arg1 : i32, i32, i32
  }
}

</mosaic_0001>

<bundles_post_ra>
// kernel: tpu_custom_call.1
= control target key start
LH: loop header
LB: loop body
LE: loop exit
PB: predicated region body
PF: predicated region fallthrough
CT: control target
= control target key end

     0   :  { %7 = vsyncpa [#allocation4], 0  ;;  %s1076_s0 = inlined_call_operand.hbm [shape: f32[24,128], index: 0, kind: input, shape index: {}]   ;;  %s1077_s1 = inlined_call_operand.hbm [shape: f32[2,128,128], index: 1, kind: input, shape index: {}]   ;;  %s1078_s2 = inlined_call_operand.hbm [shape: f32[2,24,128], index: 2, kind: output, shape index: {}]  }
   0x1   :  { %8 = vsyncpa [#allocation7], 0 }
   0x2   :  { %10 = vsyncpa [#allocation7 + $0x1], 0 }
   0x3   :  { %11 = vsyncpa [#allocation5], 0 }
   0x4   :  { %13 = vsyncpa [#allocation5 + $0x1], 0  ;;  %s832_s9 = smov 0   ;;  %s834_s10 = smov 0  }
   0x5   :  { %s836_s11 = smov 0   ;;  %s838_s12 = smov 0  }
   0x6   :  { %s840_s13 = smov 0   ;;  %s842_s14 = smov 0  }
   0x7 LB: > { %s480_s15 = sadd.s32 4294967295, %s806_s14   ;;  %s481_s16 = sadd.s32 4294967294, %s806_s14   ;;  %s806_s14 = sphi %s842_s14, %s19_s14   ;;  %s802_s13 = sphi %s840_s13, %s1098_s13   ;;  %s798_s12 = sphi %s838_s12, %s1097_s12   ;;  %s794_s11 = sphi %s836_s11, %s1096_s11   ;;  %s790_s10 = sphi %s834_s10, %s1095_s10   ;;  %s786_s9 = sphi %s832_s9, %s1094_s9  }
   0x8   : > { %p97_p0 = scmp.ne.s32.totalorder %s790_s10, %s786_s9  ;;  %p866_p1 = scmp.eq.s32.totalorder %s480_s15, 0 }
   0x9   : > { %p870_p2 = scmp.eq.s32.totalorder %s480_s15, 1  ;;  %p131_p3 = scmp.eq.s32.totalorder %s481_s16, 1 }
   0xa   : > { %p876_p4 = por %p866_p1, %p97_p0  ;;  %p482_p5 = scmp.ge.s32.totalorder %s806_s14, 1 }
   0xb   : > { %p881_p6 = por %p131_p3, %p97_p0  ;;  %p138_p7 = scmp.lt.s32.totalorder %s806_s14, 3 }
   0xc   : > { %s1083_s19 = scalar_select %p876_p4, 1, 0 }
   0xd   : > { %s1084_s20 = scalar_select %p881_p6, 1, 0 }
   0xe   : > { %p886_p8 = pnand %p482_p5, %p138_p7  ;;  %s808_s22 = smov [#allocation3]  }
   0xf   : > { %s154_s23 = sshll.u32 %s808_s22, 4  ;;  %s45_s25 = sadd.s32 1, %s802_s13  ;;  %s155_s23 = int_to_ptr.vmem [resolvable:$true] %s154_s23 }
  0x10   : > { %p597_p9 = pneg %p886_p8  ;;  %s679_s26 = scalar_lea.vmem %s155_s23, 384 }
  0x11   : > { %p680_p13 = scmp.ne.s32.totalorder %s155_s23, %s679_s26  ;;  %p687_p5 = scmp.lt.s32.totalorder %s155_s23, %s155_s23 }
  0x12   : > { %p895_p11 = pnand %p597_p9, %p866_p1  ;;  %p688_p7 = scmp.lt.s32.totalorder %s679_s26, %s679_s26 }
  0x14   : > { %p670_p12 = pneg %p895_p11  ;;  %p689_p6 = por %p688_p7, %p687_p5 }
  0x16   : > { %p682_p0 = pnand %p680_p13, %p670_p12 }
  0x18   : > { %p683_p3 = pneg %p682_p0 }
  0x1a   : > { %p690_p4 = pnand %p689_p6, %p683_p3 }
  0x1c   : > { %693 = shalt.err (!%p690_p4)
}
  0x1d   : > { %s1080_s27 = smov 128   ;;  %s810_s28 = smov 8  }
  0x1e   : > { %600 = dma.hbm_to_vmem [thread:$0]  (!%p895_p11), %s1076_s0, 384, %s155_s23, [#allocation4], %s1080_s27, %s1080_s27, %s810_s28  }
  0x1f   : > { %p47_p4 = scmp.ge.s32.totalorder %s45_s25, 2  ;;  %s84_s3 = sadd.s32 1, %s794_s11 }
  0x20   : > { %p91_p6 = scmp.ne.s32.totalorder %s794_s11, %s790_s10  ;;  %p92_p9 = scmp.eq.s32.totalorder %s806_s14, 0 }
  0x21   : > { %s1100_s25 = smov (%p47_p4, %s45_s25), 0  ;;  %p610_p0 = scmp.lt.s32.totalorder %s806_s14, 2 }
  0x22   : > { %p916_p12 = por %p92_p9, %p91_p6  ;;  %p922_p13 = por %p870_p2, %p91_p6 }
  0x23   : > { %s77_s6 = ssub.s32 %s802_s13, %s1100_s25  ;;  %s168_s7 = sand.u32 1, %s794_s11  }
  0x24   : > { %p82_p11 = scmp.eq.s32.totalorder %s77_s6, 0  ;;  %s485_s8 = sshll.u32 %s168_s7, 7 }
  0x25   : > { %s494_s16 = sshll.u32 %s802_s13, 11  ;;  %s172_s26 = scalar_lea.vmem [#allocation6], %s485_s8 }
  0x26   : > { %s931_s15 = scalar_select %p82_p11, %s794_s11, %s84_s3  }
  0x27   : > { %s181_s24 = scalar_lea.hbm %s1077_s1, %s494_s16  ;;  %s182_s29 = sshll.u32 %s172_s26, 4  ;;  %s183_s29 = int_to_ptr.vmem [resolvable:$true] %s182_s29 }
  0x28   : > { %p939_p2 = pnand %p610_p0, %p916_p12  ;;  %s169_s30 = scalar_lea.sflag [#allocation7], %s168_s7 }
  0x29   : > { %s707_s6 = scalar_lea.vmem %s183_s29, 2048  ;;  %s811_s3 = smov [#allocation6]  }
  0x2a   : > { %p696_p3 = pneg %p939_p2  ;;  %p708_p5 = scmp.ne.s32.totalorder %s183_s29, %s707_s6 }
  0x2b   : > { %s712_s27 = sshll.u32 %s811_s3, 4  ;;  %s713_s27 = int_to_ptr.vmem [resolvable:$false] %s712_s27 }
  0x2c   : > { %p710_p7 = pnand %p708_p5, %p696_p3  ;;  %s714_s16 = scalar_lea.vmem %s713_s27, 4096 }
  0x2d   : > { %p715_p6 = scmp.lt.s32.totalorder %s183_s29, %s713_s27  ;;  %p716_p9 = scmp.lt.s32.totalorder %s714_s16, %s707_s6 }
  0x2e   : > { %p711_p4 = pneg %p710_p7 }
  0x2f   : > { %p717_p11 = por %p716_p9, %p715_p6 }
  0x31   : > { %p718_p10 = pnand %p717_p11, %p711_p4 }
  0x33   : > { %721 = shalt.err (!%p718_p10)
}
  0x34   : > { %s1090_s4 = smov 128   ;;  %194 = sbr.rel (%p886_p8) target bundleno = 308 (0x134), region = 28 }
  0x35   : > { %604 = dma.hbm_to_vmem [thread:$0]  (!%p939_p2), %s181_s24, 2048, %s183_s29, %s169_s30, %s1090_s4, %s1090_s4, %s810_s28  }
  0x39   : > { %773 = dma.done.wait (%p866_p1), [#allocation4], 384  }
  0x3a   : > { %775 = vsyncadd (%p866_p1), [#allocation4], 4294966912  ;;  %s957_s27 = sand.u32 1, %s790_s10   ;;  %p1091_p10 = scmp.ne.s32.totalorder %s1083_s19, 0 }
  0x3b   : > { %s490_s7 = sshll.u32 %s957_s27, 7  ;;  %s201_s8 = scalar_lea.sflag [#allocation7], %s957_s27 }
  0x3c   : > { %s961_s22 = scalar_lea.vmem [#allocation6], %s490_s7 }
  0x3d   : > { %777 = dma.done.wait (%p1091_p10), %s201_s8, 2048  }
  0x3e   : > { %779 = vsyncadd (%p1091_p10), %s201_s8, 4294965248  ;;  %v812_v0 = vmov 0.0   ;;  %vm813_vm0 = vmmov 0   ;;  %v256_v1 = vld [vmem:[%s961_s22 + $0x78] sm:$0xff]  ;;  %v255_v2 = vld [vmem:[%s961_s22 + $0x70] sm:$0xff]  ;;  %s587_s17 = smul.u32 24, %s957_s27 }
  0x3f   : > { %555 = vmatprep.subr.mxu1 %v812_v0  ;;  %514 = vmatprep.subr.mxu0 %v812_v0  ;;  %v254_v3 = vld [vmem:[%s961_s22 + $0x68] sm:$0xff]  ;;  %v253_v4 = vld [vmem:[%s961_s22 + $0x60] sm:$0xff]  ;;  %v252_v5 = vld [vmem:[%s961_s22 + $0x58] sm:$0xff]  ;;  %s588_s28 = smul.u32 384, %s798_s12  ;;  %s353_s12 = scalar_lea.sflag [#allocation5], %s957_s27 }
  0x40   : > { %549 = vmatprep.mubr.msk.f32.mxu1 %vm813_vm0, %v812_v0  ;;  %546 = vmatprep.mubr.msk.f32.mxu0 %vm813_vm0, %v812_v0  ;;  %v251_v6 = vld [vmem:[%s961_s22 + $0x50] sm:$0xff]  ;;  %v250_v7 = vld [vmem:[%s961_s22 + $0x48] sm:$0xff]  ;;  %v249_v8 = vld [vmem:[%s961_s22 + $0x40] sm:$0xff]  ;;  %s224_s19 = scalar_lea.vmem [#allocation8], %s587_s17  ;;  %s814_s18 = smov [#allocation8]  }
  0x41   : > { %571 = vmatpush3.msra.mxu1 %v256_v1  ;;  %515 = vmatpush3.msra.mxu0 %v256_v1  ;;  %v248_v9 = vld [vmem:[%s961_s22 + $0x38] sm:$0xff]  ;;  %v247_v10 = vld [vmem:[%s961_s22 + $0x30] sm:$0xff]  ;;  %v246_v11 = vld [vmem:[%s961_s22 + $0x28] sm:$0xff]  ;;  %s369_s21 = sshll.u32 %s224_s19, 4  ;;  %s1028_s26 = scalar_lea.hbm %s1078_s2, %s588_s28  ;;  %s1023_s21 = int_to_ptr.vmem [resolvable:$true] %s369_s21 }
  0x42   : > { %556 = vmatprep.subr.mxu1 %v812_v0  ;;  %516 = vmatprep.subr.mxu0 %v812_v0  ;;  %v245_v12 = vld [vmem:[%s961_s22 + $0x20] sm:$0xff]  ;;  %v244_v13 = vld [vmem:[%s961_s22 + $0x18] sm:$0xff]  ;;  %v243_v14 = vld [vmem:[%s961_s22 + $0x10] sm:$0xff]  ;;  %s722_s29 = scalar_lea.vmem %s1023_s21, 384  ;;  %s726_s30 = sshll.u32 %s814_s18, 4  ;;  %s727_s30 = int_to_ptr.vmem [resolvable:$false] %s726_s30 }
  0x43   : > { %572 = vmatpush3.msra.mxu1 %v255_v2  ;;  %517 = vmatpush3.msra.mxu0 %v255_v2  ;;  %v242_v15 = vld [vmem:[%s961_s22 + $0x8] sm:$0xff]  ;;  %v241_v16 = vld [vmem:[%s961_s22] sm:$0xff]  ;;  %v239_v17 = vld [vmem:[#allocation3 + $0x8] sm:$0xff]  ;;  %p723_p1 = scmp.ne.s32.totalorder %s1023_s21, %s722_s29  ;;  %s728_s6 = scalar_lea.vmem %s727_s30, 768 }
  0x44   : > { %557 = vmatprep.subr.mxu1 %v812_v0  ;;  %518 = vmatprep.subr.mxu0 %v812_v0  ;;  %v238_v18 = vld [vmem:[#allocation3] sm:$0xff]  ;;  %v240_v19 = vld [vmem:[#allocation3 + $0x10] sm:$0xff]  ;;  %p729_p0 = scmp.lt.s32.totalorder %s1023_s21, %s727_s30  ;;  %p730_p2 = scmp.lt.s32.totalorder %s728_s6, %s722_s29 }
  0x45   : > { %573 = vmatpush3.msra.mxu1 %v254_v3  ;;  %519 = vmatpush3.msra.mxu0 %v254_v3  ;;  %p724_p8 = pnand %p723_p1, %p922_p13 }
  0x46   : > { %558 = vmatprep.subr.mxu1 %v812_v0  ;;  %520 = vmatprep.subr.mxu0 %v812_v0  ;;  %p731_p3 = por %p730_p2, %p729_p0 }
  0x47   : > { %574 = vmatpush3.msra.mxu1 %v253_v4  ;;  %521 = vmatpush3.msra.mxu0 %v253_v4  ;;  %p725_p12 = pneg %p724_p8 }
  0x48   : > { %559 = vmatprep.subr.mxu1 %v812_v0  ;;  %522 = vmatprep.subr.mxu0 %v812_v0 }
  0x49   : > { %575 = vmatpush3.msra.mxu1 %v252_v5  ;;  %523 = vmatpush3.msra.mxu0 %v252_v5  ;;  %p732_p5 = pnand %p731_p3, %p725_p12 }
  0x4a   : > { %560 = vmatprep.subr.mxu1 %v812_v0  ;;  %524 = vmatprep.subr.mxu0 %v812_v0 }
  0x4b   : > { %576 = vmatpush3.msra.mxu1 %v251_v6  ;;  %525 = vmatpush3.msra.mxu0 %v251_v6 }
  0x4c   : > { %561 = vmatprep.subr.mxu1 %v812_v0  ;;  %526 = vmatprep.subr.mxu0 %v812_v0 }
  0x4d   : > { %577 = vmatpush3.msra.mxu1 %v250_v7  ;;  %527 = vmatpush3.msra.mxu0 %v250_v7 }
  0x4e   : > { %562 = vmatprep.subr.mxu1 %v812_v0  ;;  %528 = vmatprep.subr.mxu0 %v812_v0 }
  0x4f   : > { %578 = vmatpush3.msra.mxu1 %v249_v8  ;;  %529 = vmatpush3.msra.mxu0 %v249_v8 }
  0x50   : > { %563 = vmatprep.subr.mxu1 %v812_v0  ;;  %530 = vmatprep.subr.mxu0 %v812_v0 }
  0x51   : > { %579 = vmatpush3.msra.mxu1 %v248_v9  ;;  %531 = vmatpush3.msra.mxu0 %v248_v9 }
  0x52   : > { %564 = vmatprep.subr.mxu1 %v812_v0  ;;  %532 = vmatprep.subr.mxu0 %v812_v0 }
  0x53   : > { %580 = vmatpush3.msra.mxu1 %v247_v10  ;;  %533 = vmatpush3.msra.mxu0 %v247_v10 }
  0x54   : > { %565 = vmatprep.subr.mxu1 %v812_v0  ;;  %534 = vmatprep.subr.mxu0 %v812_v0 }
  0x55   : > { %581 = vmatpush3.msra.mxu1 %v246_v11  ;;  %535 = vmatpush3.msra.mxu0 %v246_v11 }
  0x56   : > { %566 = vmatprep.subr.mxu1 %v812_v0  ;;  %536 = vmatprep.subr.mxu0 %v812_v0 }
  0x57   : > { %582 = vmatpush3.msra.mxu1 %v245_v12  ;;  %537 = vmatpush3.msra.mxu0 %v245_v12 }
  0x58   : > { %567 = vmatprep.subr.mxu1 %v812_v0  ;;  %538 = vmatprep.subr.mxu0 %v812_v0 }
  0x59   : > { %583 = vmatpush3.msra.mxu1 %v244_v13  ;;  %539 = vmatpush3.msra.mxu0 %v244_v13 }
  0x5a   : > { %568 = vmatprep.subr.mxu1 %v812_v0  ;;  %540 = vmatprep.subr.mxu0 %v812_v0 }
  0x5b   : > { %584 = vmatpush3.msra.mxu1 %v243_v14  ;;  %541 = vmatpush3.msra.mxu0 %v243_v14 }
  0x5c   : > { %569 = vmatprep.subr.mxu1 %v812_v0  ;;  %542 = vmatprep.subr.mxu0 %v812_v0 }
  0x5d   : > { %585 = vmatpush3.msra.mxu1 %v242_v15  ;;  %543 = vmatpush3.msra.mxu0 %v242_v15 }
  0x5e   : > { %570 = vmatprep.subr.mxu1 %v812_v0  ;;  %544 = vmatprep.subr.mxu0 %v812_v0 }
  0x5f   : > { %586 = vmatpush3.msra.mxu1 %v241_v16  ;;  %545 = vmatpush3.msra.mxu0 %v241_v16 }
  0x60   : > { %550 = vmatmul.mubr.f32.vlgmr.msra.gmra.mxu1 %v239_v17  ;;  %547 = vmatmul.mubr.f32.vlgmr.msra.gmra.mxu0 %v238_v18 }
  0x61   : > { %552 = vmatprep.mubr.msk.f32.mxu1 %vm813_vm0, %v812_v0 }
  0x64   : > { %553 = vmatmul.mubr.f32.gmra.mxu1 %v240_v19 }
 0x120   : > { %v328_v20 = vpop.f32.mrf.mxu1  ;;  %v323_v21 = vpop.f32.mrf.mxu0 }
 0x121   : > { %350 = vst [vmem:[%s224_s19 + $0x8] sm:$0xff] %v328_v20  ;;  %349 = vst [vmem:[%s224_s19] sm:$0xff] %v323_v21 }
 0x122   : > { %v551_v22 = vpop.f32.mrf.mxu1  ;;  %v548_v23 = vpop.f32.mrf.mxu0 }
 0x124   : > { %v333_v24 = vpop.f32.mrf.mxu1 }
 0x125   : > { %351 = vst [vmem:[%s224_s19 + $0x10] sm:$0xff] %v333_v24 }
 0x126   : > { %v554_v25 = vpop.f32.mrf.mxu1 }
 0x127   : > { %735 = shalt.err (!%p732_p5)
}
 0x128   : > { %s736_s3 = scalar_lea.hbm %s1028_s26, 384  ;;  %s740_s7 = scalar_lea.hbm %s1078_s2, 768 }
 0x129   : > { %p737_p7 = scmp.ne.s32.totalorder %s1028_s26, %s736_s3  ;;  %p741_p9 = scmp.lt.s32.totalorder %s1028_s26, %s1078_s2 }
 0x12a   : > { %p742_p11 = scmp.lt.s32.totalorder %s740_s7, %s736_s3 }
 0x12b   : > { %p738_p4 = pnand %p737_p7, %p922_p13 }
 0x12c   : > { %p743_p10 = por %p742_p11, %p741_p9 }
 0x12d   : > { %p739_p6 = pneg %p738_p4 }
 0x12f   : > { %p744_p1 = pnand %p743_p10, %p739_p6 }
 0x131   : > { %747 = shalt.err (!%p744_p1)
}
 0x132   : > { %s815_s17 = smov 128   ;;  %s816_s19 = smov 8  }
 0x133   : > { %595 = dma.vmem_to_hbm [thread:$0]  (%p922_p13), %s1023_s21, 384, %s1028_s26, %s353_s12, %s815_s17, %s815_s17, %s816_s19  }
 0x134 PF: > { %s384_s28 = sand.u32 1, %s786_s9   ;;  %p1092_p8 = scmp.ne.s32.totalorder %s1084_s20, 0 }
 0x135   : > { %p1093_p12 = scmp.ge.s32.totalorder %s806_s14, 2  ;;  %s385_s23 = scalar_lea.sflag [#allocation5], %s384_s28 }
 0x137   : > { %p606_p0 = pnand %p1093_p12, %p1092_p8 }
 0x139   : > { %p607_p2 = pneg %p606_p0 }
 0x13b   : > { %781 = dma.done.wait (%p607_p2), %s385_s23, 384  }
 0x13c   : > { %783 = vsyncadd (%p607_p2), %s385_s23, 4294966912  ;;  %s19_s14 = sadd.s32 1, %s806_s14   ;;  %s1094_s9 = smov %s790_s10 }
 0x13d   : > { %p16_p3 = scmp.ge.s32.totalorder %s19_s14, 4   ;;  %s1095_s10 = smov %s794_s11 }
 0x13e   : > { %s1096_s11 = smov %s931_s15  ;;  %s1097_s12 = smov %s802_s13 }
 0x13f   : > { %s1098_s13 = smov %s1100_s25  ;;  %18 = sbr.rel (!%p16_p3) target bundleno = 7 (0x7), region = 87 }
 0x144   :  { %390 = vsyncpa [#allocation4], 1 }
 0x145   :  { %392 = vsyncpa [#allocation4 + $0x1], 1 }
 0x146   :  { %393 = vsyncpa [#allocation7], 1 }
 0x147   :  { %395 = vsyncpa [#allocation7 + $0x1], 1 }
 0x148   :  { %396 = vsyncpa [#allocation5], 1 }
 0x149   :  { %398 = vsyncpa [#allocation5 + $0x1], 1 }

</bundles_post_ra>
